<compile_context>
chip_gen: v7x
topology: tpu7x:2x2x1
jax: 0.10.0
libtpu: 0.0.40
codegen_flags: <defaults>
</compile_context>

<pallas_src>
import jax
import jax.numpy as jnp
from jax.experimental import pallas as pl
from jax.experimental.pallas import tpu as pltpu


def _sigmoid(x):
    return 1.0 / (1.0 + jnp.exp(-x))


def fusion_kernel(x_ref, w1_ref, w2_ref, wf_ref, bf_ref, wo_ref, bo_ref, o_ref):
    # x_ref block: (Bt, C, HW) -- channels on sublanes, spatial on lanes.
    Bt, C, HW = x_ref.shape
    inv_hw = 1.0 / HW

    # --- Global average / max pooling (lane reductions), one column per stat. ---
    avg_cols = []
    max_cols = []
    for b in range(Bt):                                                  # Bt is static
        xb = x_ref[b]                                                    # (C, HW)
        avg_cols.append(jnp.sum(xb, axis=-1, keepdims=True) * inv_hw)    # (C, 1)
        max_cols.append(jnp.max(xb, axis=-1, keepdims=True))             # (C, 1)
    pooled = jnp.concatenate(avg_cols + max_cols, axis=-1)               # (C, 2*Bt)

    # --- Shared MLP, run ONCE for both stats of every batch element. ---
    h = jnp.maximum(
        jnp.dot(w1_ref[...], pooled, preferred_element_type=jnp.float32), 0.0)  # (Cr, 2Bt)
    z = _sigmoid(
        jnp.dot(w2_ref[...], h, preferred_element_type=jnp.float32))            # (C, 2Bt)
    s = z[:, :Bt] + z[:, Bt:]                                            # (C, Bt)

    # --- "fusion" 1x1 conv (BN folded) + ReLU -> per-channel gate (+1 residual). ---
    g = jnp.dot(wf_ref[...], s, preferred_element_type=jnp.float32) + bf_ref[...]
    gate = jnp.maximum(g, 0.0) + 1.0                                     # (C, Bt)

    # --- Apply gate (lane broadcast) + "outlayer" 1x1 conv (BN folded) + ReLU. ---
    for b in range(Bt):
        yb = x_ref[b] * gate[:, b:b + 1]                                 # (C, HW)
        ob = jnp.dot(wo_ref[...], yb, preferred_element_type=jnp.float32) + bo_ref[...]
        o_ref[b] = jnp.maximum(ob, 0.0)                                  # (Cout, HW)


def _full_spec(a):
    nd = a.ndim
    return pl.BlockSpec(a.shape, lambda i, _nd=nd: (0,) * _nd)


def _fold_params(p):
    """Fold eval-mode BN scale/shift into the 1x1 conv weights/biases."""
    C = p["wf"].shape[0]
    Cout = p["wo"].shape[0]
    wf = (p["wf"] * p["sf"][:, None]).astype(jnp.float32)                # (C, C)
    bf = (p["bf"] * p["sf"] + p["tf"]).reshape(C, 1).astype(jnp.float32)
    wo = (p["wo"] * p["so"][:, None]).astype(jnp.float32)                # (Cout, C)
    bo = (p["bo"] * p["so"] + p["to"]).reshape(Cout, 1).astype(jnp.float32)
    return (p["w1"], p["w2"], wf, bf, wo, bo)


def _pick_block_batch(B, C, Cout, HW, budget_bytes=24 << 20):
    """Largest divisor of B whose double-buffered block footprint fits the budget."""
    best = 1
    for bt in range(1, B + 1):
        if B % bt:
            continue
        if 2 * 4 * bt * HW * (C + Cout) <= budget_bytes:
            best = bt
    return best


def fusion_layer_pallas(x_nchw, params, block_batch=None):
    """x_nchw: (B, C, H, W) float32. Returns (B, Cout, H, W)."""
    B, C, H, W = x_nchw.shape
    HW = H * W
    weights = _fold_params(params)
    Cout = weights[4].shape[0]

    if block_batch is None or B % block_batch != 0:
        block_batch = _pick_block_batch(B, C, Cout, HW)
    Bt = block_batch

    # NCHW -> (B, C, HW): a pure reshape, no transpose (no extra HBM traffic).
    x = x_nchw.reshape(B, C, HW)

    # Size the scoped VMEM limit from the real footprint (double-buffered blocks
    # + weights + headroom), clamped to a value safe on v5e/v6e/v7x.
    blk_bytes = 4 * Bt * HW * (C + Cout)
    w_bytes = sum(int(w.size) * 4 for w in weights)
    vmem_limit = int(min(max(2 * blk_bytes + 2 * w_bytes + (2 << 20), 16 << 20),
                         48 << 20))

    out = pl.pallas_call(
        fusion_kernel,
        out_shape=jax.ShapeDtypeStruct((B, Cout, HW), jnp.float32),
        grid_spec=pltpu.PrefetchScalarGridSpec(
            num_scalar_prefetch=0,
            grid=(B // Bt,),
            in_specs=[pl.BlockSpec((Bt, C, HW), lambda i: (i, 0, 0))]
                     + [_full_spec(w) for w in weights],
            out_specs=pl.BlockSpec((Bt, Cout, HW), lambda i: (i, 0, 0)),
        ),
        compiler_params=pltpu.CompilerParams(
            dimension_semantics=("parallel",),
            vmem_limit_bytes=vmem_limit),
    )(x, *weights)

    # (B, Cout, HW) -> NCHW: pure reshape.
    return out.reshape(B, Cout, H, W)


def make_params(key, inchannel, outchannel, reduction=16, bn_eps=1e-5):
    C, Cout = inchannel, outchannel
    Cr = max(C // reduction, 1)
    ks = jax.random.split(key, 12)

    def nrm(k, shape, scale):
        return (scale * jax.random.normal(k, shape)).astype(jnp.float32)

    # fc: Linear(C, Cr, bias=False), Linear(Cr, C, bias=False) -- (out, in) layout.
    w1 = nrm(ks[0], (Cr, C), 1.0 / (C ** 0.5))
    w2 = nrm(ks[1], (C, Cr), 1.0 / (Cr ** 0.5))

    # fusion ConvBlock: Conv2d(C, C, 1) + BN(C).
    wf = nrm(ks[2], (C, C), 1.0 / (C ** 0.5))
    bf = nrm(ks[3], (C,), 0.1)
    gamma_f = (1.0 + 0.05 * jax.random.normal(ks[4], (C,))).astype(jnp.float32)
    beta_f = (0.05 * jax.random.normal(ks[5], (C,))).astype(jnp.float32)
    rm_f = (0.1 * jax.random.normal(ks[6], (C,))).astype(jnp.float32)
    rv_f = (1.0 + 0.1 * jnp.abs(jax.random.normal(ks[7], (C,)))).astype(jnp.float32)
    sf = gamma_f / jnp.sqrt(rv_f + bn_eps)
    tf = beta_f - rm_f * sf

    # outlayer ConvBlock: Conv2d(C, Cout, 1) + BN(Cout).
    wo = nrm(ks[8], (Cout, C), 1.0 / (C ** 0.5))
    bo = nrm(ks[9], (Cout,), 0.1)
    gamma_o = (1.0 + 0.05 * jax.random.normal(ks[10], (Cout,))).astype(jnp.float32)
    beta_o = (0.05 * jax.random.normal(ks[11], (Cout,))).astype(jnp.float32)
    rm_o = jnp.zeros((Cout,), jnp.float32)
    rv_o = jnp.ones((Cout,), jnp.float32)
    so = gamma_o / jnp.sqrt(rv_o + bn_eps)
    to = beta_o - rm_o * so

    return dict(w1=w1, w2=w2, wf=wf, bf=bf, sf=sf, tf=tf,
                wo=wo, bo=bo, so=so, to=to)


def fusion_layer_ref(x, p):
    """Pure-JAX reference mirroring the PyTorch forward (eval-mode BN)."""
    hi = jax.lax.Precision.HIGHEST
    avg = jnp.mean(x, axis=(2, 3))                       # (B, C)
    mx = jnp.max(x, axis=(2, 3))                         # (B, C)

    def fc(v):                                           # v: (B, C)
        h = jnp.maximum(jnp.dot(v, p["w1"].T, precision=hi), 0.0)   # (B, Cr)
        return _sigmoid(jnp.dot(h, p["w2"].T, precision=hi))        # (B, C)

    s = fc(avg) + fc(mx)                                 # (B, C)
    g = jnp.dot(s, p["wf"].T, precision=hi) + p["bf"][None, :]
    g = jnp.maximum(g * p["sf"][None, :] + p["tf"][None, :], 0.0)    # (B, C)
    y = x * g[:, :, None, None] + x                      # (B, C, H, W)
    out = jnp.einsum("oc,bchw->bohw", p["wo"], y,
                     precision=hi) + p["bo"][None, :, None, None]
    out = jnp.maximum(out * p["so"][None, :, None, None]
                      + p["to"][None, :, None, None], 0.0)
    return out


if __name__ == "__main__":
    key = jax.random.PRNGKey(0)
    kx, kp = jax.random.split(key)

    B, C, H, W = 4, 32, 16, 16        # inchannel=32 so inchannel // 16 = 2
    Cout, reduction = 16, 16

    x = jax.random.normal(kx, (B, C, H, W), dtype=jnp.float32)
    params = make_params(kp, C, Cout, reduction)

    out = fusion_layer_pallas(x, params, block_batch=2)   # grid = (2,)
    out = jax.block_until_ready(out)

    ref = fusion_layer_ref(x, params)
    assert out.shape == (B, Cout, H, W), out.shape
    max_err = float(jnp.max(jnp.abs(out - ref)))
    assert jnp.allclose(out, ref, atol=2e-3, rtol=2e-3), max_err

    print("KERNEL_OK")
</pallas_src>

<mosaic_0001>
module attributes {stable_mosaic.version = 11 : i64} {
  func.func @fusion_kernel(%arg0: i32, %arg1: memref<2x32x256xf32, #tpu.memory_space<vmem>>, %arg2: memref<2x32xf32, #tpu.memory_space<vmem>>, %arg3: memref<32x2xf32, #tpu.memory_space<vmem>>, %arg4: memref<32x32xf32, #tpu.memory_space<vmem>>, %arg5: memref<32x1xf32, #tpu.memory_space<vmem>>, %arg6: memref<16x32xf32, #tpu.memory_space<vmem>>, %arg7: memref<16x1xf32, #tpu.memory_space<vmem>>, %arg8: memref<2x16x256xf32, #tpu.memory_space<vmem>>) attributes {dimension_semantics = [#tpu.dimension_semantics<parallel>], iteration_bounds = array<i64: 2>, scalar_prefetch = 0 : i64, scratch_operands = 0 : i64, tpu.core_type = #tpu.core_type<tc>, window_params = [{transform_indices = @transform_0, window_bounds = array<i64: 2, 32, 256>}, {pipeline_mode = #tpu.pipeline_mode<synchronous>, transform_indices = @transform_1, window_bounds = array<i64: 2, 32>}, {pipeline_mode = #tpu.pipeline_mode<synchronous>, transform_indices = @transform_2, window_bounds = array<i64: 32, 2>}, {pipeline_mode = #tpu.pipeline_mode<synchronous>, transform_indices = @transform_3, window_bounds = array<i64: 32, 32>}, {pipeline_mode = #tpu.pipeline_mode<synchronous>, transform_indices = @transform_4, window_bounds = array<i64: 32, 1>}, {pipeline_mode = #tpu.pipeline_mode<synchronous>, transform_indices = @transform_5, window_bounds = array<i64: 16, 32>}, {pipeline_mode = #tpu.pipeline_mode<synchronous>, transform_indices = @transform_6, window_bounds = array<i64: 16, 1>}, {transform_indices = @transform_7, window_bounds = array<i64: 2, 16, 256>}]} {
    %c0 = arith.constant 0 : index
    %c0_0 = arith.constant 0 : index
    %c0_1 = arith.constant 0 : index
    %0 = vector.load %arg1[%c0, %c0_0, %c0_1] : memref<2x32x256xf32, #tpu.memory_space<vmem>>, vector<1x32x256xf32>
    %1 = vector.shape_cast %0 : vector<1x32x256xf32> to vector<32x256xf32>
    %cst = arith.constant dense<0.000000e+00> : vector<32xf32>
    %2 = vector.multi_reduction <add>, %1, %cst [1] : vector<32x256xf32> to vector<32xf32>
    %3 = vector.shape_cast %2 : vector<32xf32> to vector<32x1xf32>
    %cst_2 = arith.constant 3.906250e-03 : f32
    %4 = vector.broadcast %cst_2 : f32 to vector<32x1xf32>
    %5 = arith.mulf %3, %4 : vector<32x1xf32>
    %cst_3 = arith.constant dense<0xFF800000> : vector<32xf32>
    %6 = vector.multi_reduction <maximumf>, %1, %cst_3 [1] : vector<32x256xf32> to vector<32xf32>
    %7 = vector.shape_cast %6 : vector<32xf32> to vector<32x1xf32>
    %c1 = arith.constant 1 : index
    %c0_4 = arith.constant 0 : index
    %c0_5 = arith.constant 0 : index
    %8 = vector.load %arg1[%c1, %c0_4, %c0_5] : memref<2x32x256xf32, #tpu.memory_space<vmem>>, vector<1x32x256xf32>
    %9 = vector.shape_cast %8 : vector<1x32x256xf32> to vector<32x256xf32>
    %cst_6 = arith.constant dense<0.000000e+00> : vector<32xf32>
    %10 = vector.multi_reduction <add>, %9, %cst_6 [1] : vector<32x256xf32> to vector<32xf32>
    %11 = vector.shape_cast %10 : vector<32xf32> to vector<32x1xf32>
    %cst_7 = arith.constant 3.906250e-03 : f32
    %12 = vector.broadcast %cst_7 : f32 to vector<32x1xf32>
    %13 = arith.mulf %11, %12 : vector<32x1xf32>
    %cst_8 = arith.constant dense<0xFF800000> : vector<32xf32>
    %14 = vector.multi_reduction <maximumf>, %9, %cst_8 [1] : vector<32x256xf32> to vector<32xf32>
    %15 = vector.shape_cast %14 : vector<32xf32> to vector<32x1xf32>
    %16 = tpu.concatenate %5, %13, %7, %15 in 1 : vector<32x1xf32>, vector<32x1xf32>, vector<32x1xf32>, vector<32x1xf32> -> vector<32x4xf32>
    %c0_9 = arith.constant 0 : index
    %c0_10 = arith.constant 0 : index
    %17 = vector.load %arg2[%c0_9, %c0_10] : memref<2x32xf32, #tpu.memory_space<vmem>>, vector<2x32xf32>
    %cst_11 = arith.constant dense<0.000000e+00> : vector<2x4xf32>
    %18 = tpu.matmul %17, %16, %cst_11 {dimension_numbers = #tpu.dot_dimension_numbers<[1], [0], [0], [1], [0, 0, 1, 1], [], []>} : vector<2x32xf32>, vector<32x4xf32>, vector<2x4xf32> -> vector<2x4xf32>
    %cst_12 = arith.constant 0.000000e+00 : f32
    %19 = vector.broadcast %cst_12 : f32 to vector<2x4xf32>
    %20 = arith.maximumf %18, %19 : vector<2x4xf32>
    %c0_13 = arith.constant 0 : index
    %c0_14 = arith.constant 0 : index
    %21 = vector.load %arg3[%c0_13, %c0_14] : memref<32x2xf32, #tpu.memory_space<vmem>>, vector<32x2xf32>
    %cst_15 = arith.constant dense<0.000000e+00> : vector<32x4xf32>
    %22 = tpu.matmul %21, %20, %cst_15 {dimension_numbers = #tpu.dot_dimension_numbers<[1], [0], [0], [1], [0, 0, 1, 1], [], []>} : vector<32x2xf32>, vector<2x4xf32>, vector<32x4xf32> -> vector<32x4xf32>
    %cst_16 = arith.constant 0.000000e+00 : f32
    %23 = vector.broadcast %cst_16 : f32 to vector<32x4xf32>
    %24 = arith.subf %23, %22 : vector<32x4xf32>
    %25 = math.exp %24 : vector<32x4xf32>
    %cst_17 = arith.constant 1.000000e+00 : f32
    %26 = vector.broadcast %cst_17 : f32 to vector<32x4xf32>
    %27 = arith.addf %26, %25 : vector<32x4xf32>
    %cst_18 = arith.constant 1.000000e+00 : f32
    %28 = vector.broadcast %cst_18 : f32 to vector<32x4xf32>
    %29 = arith.divf %28, %27 : vector<32x4xf32>
    %30 = vector.extract_strided_slice %29 {offsets = [0, 0], sizes = [32, 2], strides = [1, 1]} : vector<32x4xf32> to vector<32x2xf32>
    %31 = vector.extract_strided_slice %29 {offsets = [0, 2], sizes = [32, 2], strides = [1, 1]} : vector<32x4xf32> to vector<32x2xf32>
    %32 = arith.addf %30, %31 : vector<32x2xf32>
    %c0_19 = arith.constant 0 : index
    %c0_20 = arith.constant 0 : index
    %33 = vector.load %arg4[%c0_19, %c0_20] : memref<32x32xf32, #tpu.memory_space<vmem>>, vector<32x32xf32>
    %cst_21 = arith.constant dense<0.000000e+00> : vector<32x2xf32>
    %34 = tpu.matmul %33, %32, %cst_21 {dimension_numbers = #tpu.dot_dimension_numbers<[1], [0], [0], [1], [0, 0, 1, 1], [], []>} : vector<32x32xf32>, vector<32x2xf32>, vector<32x2xf32> -> vector<32x2xf32>
    %c0_22 = arith.constant 0 : index
    %c0_23 = arith.constant 0 : index
    %35 = vector.load %arg5[%c0_22, %c0_23] : memref<32x1xf32, #tpu.memory_space<vmem>>, vector<32x1xf32>
    %36 = vector.broadcast %35 : vector<32x1xf32> to vector<32x2xf32>
    %37 = arith.addf %34, %36 : vector<32x2xf32>
    %cst_24 = arith.constant 0.000000e+00 : f32
    %38 = vector.broadcast %cst_24 : f32 to vector<32x2xf32>
    %39 = arith.maximumf %37, %38 : vector<32x2xf32>
    %cst_25 = arith.constant 1.000000e+00 : f32
    %40 = vector.broadcast %cst_25 : f32 to vector<32x2xf32>
    %41 = arith.addf %39, %40 : vector<32x2xf32>
    %c0_26 = arith.constant 0 : index
    %c0_27 = arith.constant 0 : index
    %c0_28 = arith.constant 0 : index
    %42 = vector.load %arg1[%c0_26, %c0_27, %c0_28] : memref<2x32x256xf32, #tpu.memory_space<vmem>>, vector<1x32x256xf32>
    %43 = vector.shape_cast %42 : vector<1x32x256xf32> to vector<32x256xf32>
    %44 = vector.extract_strided_slice %41 {offsets = [0, 0], sizes = [32, 1], strides = [1, 1]} : vector<32x2xf32> to vector<32x1xf32>
    %45 = vector.broadcast %44 : vector<32x1xf32> to vector<32x256xf32>
    %46 = arith.mulf %43, %45 : vector<32x256xf32>
    %c0_29 = arith.constant 0 : index
    %c0_30 = arith.constant 0 : index
    %47 = vector.load %arg6[%c0_29, %c0_30] : memref<16x32xf32, #tpu.memory_space<vmem>>, vector<16x32xf32>
    %cst_31 = arith.constant dense<0.000000e+00> : vector<16x256xf32>
    %48 = tpu.matmul %47, %46, %cst_31 {dimension_numbers = #tpu.dot_dimension_numbers<[1], [0], [0], [1], [0, 0, 1, 1], [], []>} : vector<16x32xf32>, vector<32x256xf32>, vector<16x256xf32> -> vector<16x256xf32>
    %c0_32 = arith.constant 0 : index
    %c0_33 = arith.constant 0 : index
    %49 = vector.load %arg7[%c0_32, %c0_33] : memref<16x1xf32, #tpu.memory_space<vmem>>, vector<16x1xf32>
    %50 = vector.broadcast %49 : vector<16x1xf32> to vector<16x256xf32>
    %51 = arith.addf %48, %50 : vector<16x256xf32>
    %cst_34 = arith.constant 0.000000e+00 : f32
    %52 = vector.broadcast %cst_34 : f32 to vector<16x256xf32>
    %53 = arith.maximumf %51, %52 : vector<16x256xf32>
    %c0_35 = arith.constant 0 : index
    %c0_36 = arith.constant 0 : index
    %c0_37 = arith.constant 0 : index
    %54 = vector.load %arg8[%c0_35, %c0_36, %c0_37] : memref<2x16x256xf32, #tpu.memory_space<vmem>>, vector<1x16x256xf32>
    %55 = vector.shape_cast %54 : vector<1x16x256xf32> to vector<16x256xf32>
    %56 = vector.shape_cast %53 : vector<16x256xf32> to vector<1x16x256xf32>
    tpu.vector_store %arg8[%c0_35, %c0_36, %c0_37], %56 {strides = array<i32>} : memref<2x16x256xf32, #tpu.memory_space<vmem>>, vector<1x16x256xf32>,
    %c1_38 = arith.constant 1 : index
    %c0_39 = arith.constant 0 : index
    %c0_40 = arith.constant 0 : index
    %57 = vector.load %arg1[%c1_38, %c0_39, %c0_40] : memref<2x32x256xf32, #tpu.memory_space<vmem>>, vector<1x32x256xf32>
    %58 = vector.shape_cast %57 : vector<1x32x256xf32> to vector<32x256xf32>
    %59 = vector.extract_strided_slice %41 {offsets = [0, 1], sizes = [32, 1], strides = [1, 1]} : vector<32x2xf32> to vector<32x1xf32>
    %60 = vector.broadcast %59 : vector<32x1xf32> to vector<32x256xf32>
    %61 = arith.mulf %58, %60 : vector<32x256xf32>
    %c0_41 = arith.constant 0 : index
    %c0_42 = arith.constant 0 : index
    %62 = vector.load %arg6[%c0_41, %c0_42] : memref<16x32xf32, #tpu.memory_space<vmem>>, vector<16x32xf32>
    %cst_43 = arith.constant dense<0.000000e+00> : vector<16x256xf32>
    %63 = tpu.matmul %62, %61, %cst_43 {dimension_numbers = #tpu.dot_dimension_numbers<[1], [0], [0], [1], [0, 0, 1, 1], [], []>} : vector<16x32xf32>, vector<32x256xf32>, vector<16x256xf32> -> vector<16x256xf32>
    %c0_44 = arith.constant 0 : index
    %c0_45 = arith.constant 0 : index
    %64 = vector.load %arg7[%c0_44, %c0_45] : memref<16x1xf32, #tpu.memory_space<vmem>>, vector<16x1xf32>
    %65 = vector.broadcast %64 : vector<16x1xf32> to vector<16x256xf32>
    %66 = arith.addf %63, %65 : vector<16x256xf32>
    %cst_46 = arith.constant 0.000000e+00 : f32
    %67 = vector.broadcast %cst_46 : f32 to vector<16x256xf32>
    %68 = arith.maximumf %66, %67 : vector<16x256xf32>
    %c1_47 = arith.constant 1 : index
    %c0_48 = arith.constant 0 : index
    %c0_49 = arith.constant 0 : index
    %69 = vector.load %arg8[%c1_47, %c0_48, %c0_49] : memref<2x16x256xf32, #tpu.memory_space<vmem>>, vector<1x16x256xf32>
    %70 = vector.shape_cast %69 : vector<1x16x256xf32> to vector<16x256xf32>
    %71 = vector.shape_cast %68 : vector<16x256xf32> to vector<1x16x256xf32>
    tpu.vector_store %arg8[%c1_47, %c0_48, %c0_49], %71 {strides = array<i32>} : memref<2x16x256xf32, #tpu.memory_space<vmem>>, vector<1x16x256xf32>,
    return
  }
  func.func @transform_0(%arg0: i32) -> (i32, i32, i32) {
    %c0_i32 = arith.constant 0 : i32
    %c0_i32_0 = arith.constant 0 : i32
    %c0_i32_1 = arith.constant 0 : i32
    return %arg0, %c0_i32, %c0_i32_0 : i32, i32, i32
  }
  func.func @transform_1(%arg0: i32) -> (i32, i32) {
    %c0_i32 = arith.constant 0 : i32
    %c0_i32_0 = arith.constant 0 : i32
    %c0_i32_1 = arith.constant 0 : i32
    return %c0_i32, %c0_i32_0 : i32, i32
  }
  func.func @transform_2(%arg0: i32) -> (i32, i32) {
    %c0_i32 = arith.constant 0 : i32
    %c0_i32_0 = arith.constant 0 : i32
    %c0_i32_1 = arith.constant 0 : i32
    return %c0_i32, %c0_i32_0 : i32, i32
  }
  func.func @transform_3(%arg0: i32) -> (i32, i32) {
    %c0_i32 = arith.constant 0 : i32
    %c0_i32_0 = arith.constant 0 : i32
    %c0_i32_1 = arith.constant 0 : i32
    return %c0_i32, %c0_i32_0 : i32, i32
  }
  func.func @transform_4(%arg0: i32) -> (i32, i32) {
    %c0_i32 = arith.constant 0 : i32
    %c0_i32_0 = arith.constant 0 : i32
    %c0_i32_1 = arith.constant 0 : i32
    return %c0_i32, %c0_i32_0 : i32, i32
  }
  func.func @transform_5(%arg0: i32) -> (i32, i32) {
    %c0_i32 = arith.constant 0 : i32
    %c0_i32_0 = arith.constant 0 : i32
    %c0_i32_1 = arith.constant 0 : i32
    return %c0_i32, %c0_i32_0 : i32, i32
  }
  func.func @transform_6(%arg0: i32) -> (i32, i32) {
    %c0_i32 = arith.constant 0 : i32
    %c0_i32_0 = arith.constant 0 : i32
    %c0_i32_1 = arith.constant 0 : i32
    return %c0_i32, %c0_i32_0 : i32, i32
  }
  func.func @transform_7(%arg0: i32) -> (i32, i32, i32) {
    %c0_i32 = arith.constant 0 : i32
    %c0_i32_0 = arith.constant 0 : i32
    %c0_i32_1 = arith.constant 0 : i32
    return %arg0, %c0_i32, %c0_i32_0 : i32, i32, i32
  }
}

</mosaic_0001>

<bundles_post_ra>
// kernel: tpu_custom_call.1
= control target key start
LH: loop header
LB: loop body
LE: loop exit
PB: predicated region body
PF: predicated region fallthrough
CT: control target
= control target key end

     0   :  { %12 = vsyncpa [#allocation3], 0  ;;  %s1817_s0 = inlined_call_operand.hbm [shape: f32[4,32,256], index: 0, kind: input, shape index: {}]   ;;  %s1818_s1 = inlined_call_operand.vmem [shape: f32[2,32], index: 1, kind: input, shape index: {}]   ;;  %s1819_s2 = inlined_call_operand.vmem [shape: f32[32,2], index: 2, kind: input, shape index: {}]   ;;  %s1820_s3 = inlined_call_operand.vmem [shape: f32[32,32], index: 3, kind: input, shape index: {}]   ;;  %s1821_s4 = inlined_call_operand.vmem [shape: f32[32,1], index: 4, kind: input, shape index: {}]   ;;  %s1822_s5 = inlined_call_operand.vmem [shape: f32[16,32], index: 5, kind: input, shape index: {}]   ;;  %s1823_s6 = inlined_call_operand.vmem [shape: f32[16,1], index: 6, kind: input, shape index: {}]   ;;  %s1824_s7 = inlined_call_operand.hbm [shape: f32[4,16,256], index: 7, kind: output, shape index: {}]  }
   0x1   :  { %14 = vsyncpa [#allocation3 + $0x1], 0 }
   0x2   :  { %15 = vsyncpa [#allocation4], 0 }
   0x3   :  { %17 = vsyncpa [#allocation4 + $0x1], 0  ;;  %s1470_s24 = smov 0   ;;  %s1472_s25 = smov 0  }
   0x4   :  { %s1474_s26 = smov 0   ;;  %s1476_s27 = smov 0  }
   0x5 LB: > { %s1491_s28 = sadd.s32 4294967295, %s1416_s27   ;;  %s1105_s29 = sadd.s32 4294967294, %s1416_s27   ;;  %s1416_s27 = sphi %s1476_s27, %s1837_s27   ;;  %s1412_s26 = sphi %s1474_s26, %s1836_s26   ;;  %s1408_s25 = sphi %s1472_s25, %s1835_s25   ;;  %s1404_s24 = sphi %s1470_s24, %s1834_s24  }
   0x6   : > { %s1495_s30 = sadd.s32 1, %s1416_s27   ;;  %s30_s8 = sadd.s32 1, %s1412_s26 }
   0x7   : > { %s27_s9 = ssub.s32 %s1416_s27, %s1495_s30  ;;  %p37_p0 = scmp.ne.s32.totalorder %s1412_s26, %s1408_s25 }
   0x8   : > { %p28_p1 = scmp.eq.s32.totalorder %s27_s9, 0  ;;  %p38_p2 = scmp.eq.s32.totalorder %s1416_s27, 0 }
   0x9   : > { %p43_p3 = scmp.ne.s32.totalorder %s1408_s25, %s1404_s24  ;;  %p44_p4 = scmp.eq.s32.totalorder %s1491_s28, 0 }
   0xa   : > { %s1507_s10 = scalar_select %p28_p1, %s1412_s26, %s30_s8  }
   0xb   : > { %p1509_p5 = por %p38_p2, %p37_p0  ;;  %p1513_p6 = por %p44_p4, %p43_p3 }
   0xc   : > { %p193_p7 = scmp.eq.s32.totalorder %s1491_s28, 1  ;;  %p199_p8 = scmp.eq.s32.totalorder %s1105_s29, 1 }
   0xd   : > { %p1252_p10 = scmp.lt.s32.totalorder %s1416_s27, 2  ;;  %s237_s15 = sand.u32 1, %s1412_s26  }
   0xe   : > { %p1520_p11 = por %p193_p7, %p37_p0  ;;  %p1524_p12 = por %p199_p8, %p43_p3 }
   0xf   : > { %s1156_s16 = sshll.u32 %s1416_s27, 11  ;;  %s1108_s17 = sshll.u32 %s237_s15, 7 }
  0x10   : > { %s1828_s13 = scalar_select %p1520_p11, 1, 0 }
  0x11   : > { %s1829_s14 = scalar_select %p1524_p12, 1, 0 }
  0x12   : > { %s1533_s20 = scalar_lea.hbm %s1817_s0, %s1156_s16  ;;  %s241_s21 = scalar_lea.vmem [#allocation2], %s1108_s17 }
  0x13   : > { %s249_s22 = sshll.u32 %s241_s21, 4  ;;  %p1537_p13 = pnand %p1252_p10, %p1509_p5  ;;  %s1541_s22 = int_to_ptr.vmem [resolvable:$true] %s249_s22 }
  0x14   : > { %s1543_s29 = scalar_lea.sflag [#allocation3], %s237_s15  ;;  %s1320_s8 = scalar_lea.hbm %s1533_s20, 2048 }
  0x15   : > { %p1321_p0 = scmp.ne.s32.totalorder %s1533_s20, %s1320_s8  ;;  %p1322_p1 = pneg %p1537_p13 }
  0x16   : > { %s1325_s16 = scalar_lea.hbm %s1817_s0, 4096  ;;  %p1326_p4 = scmp.lt.u32.totalorder %s1533_s20, %s1817_s0 }
  0x17   : > { %p1323_p2 = pnand %p1322_p1, %p1321_p0  ;;  %p1327_p5 = scmp.lt.u32.totalorder %s1325_s16, %s1320_s8 }
  0x18   : > { %p1329_p8 = scmp.lt.u32.totalorder %s1320_s8, %s1533_s20 }
  0x19   : > { %p1324_p3 = pneg %p1323_p2  ;;  %p1328_p7 = por %p1327_p5, %p1326_p4 }
  0x1b   : > { %p1330_p10 = por %p1329_p8, %p1328_p7 }
  0x1d   : > { %p1331_p9 = pnand %p1330_p10, %p1324_p3 }
  0x1f   : > { %1334 = shalt.err (!%p1331_p9)
}
  0x20   : > { %s1335_s15 = scalar_lea.vmem %s1541_s22, 2048  ;;  %s1418_s19 = smov [#allocation2]  }
  0x21   : > { %p1336_p0 = scmp.ne.s32.totalorder %s1541_s22, %s1335_s15  ;;  %s1340_s21 = sshll.u32 %s1418_s19, 4  ;;  %s1341_s21 = int_to_ptr.vmem [resolvable:$false] %s1340_s21 }
  0x22   : > { %s1342_s9 = scalar_lea.vmem %s1341_s21, 4096  ;;  %p1343_p11 = scmp.lt.s32.totalorder %s1541_s22, %s1341_s21 }
  0x23   : > { %p1338_p2 = pnand %p1336_p0, %p1322_p1  ;;  %p1344_p4 = scmp.lt.s32.totalorder %s1342_s9, %s1335_s15 }
  0x25   : > { %p1339_p12 = pneg %p1338_p2  ;;  %p1345_p5 = por %p1344_p4, %p1343_p11 }
  0x27   : > { %p1346_p7 = pnand %p1345_p5, %p1339_p12 }
  0x29   : > { %1349 = shalt.err (!%p1346_p7)
}
  0x2a   : > { %s1419_s8 = smov 256   ;;  %s1420_s11 = smov 16  }
  0x2b   : > { %1247 = dma.hbm_to_vmem [thread:$0]  (!%p1537_p13), %s1533_s20, 2048, %s1541_s22, %s1543_s29, %s1419_s8, %s1419_s8, %s1420_s11  }
  0x2c   : > { %p1112_p9 = scmp.ge.s32.totalorder %s1416_s27, 1  ;;  %p257_p1 = scmp.lt.s32.totalorder %s1416_s27, 3 }
  0x2e   : > { %p258_p3 = pnand %p1112_p9, %p257_p1 }
  0x2f   : > { %s1574_s16 = sand.u32 (!%p258_p3), 1, %s1408_s25  }
  0x30   : > { %261 = sbr.rel (%p258_p3) target bundleno = 1434 (0x59a), region = 48  ;;  %s1113_s17 = sshll.u32 (!%p258_p3), %s1574_s16, 7 }
  0x31   : > { %s264_s18 = scalar_lea.sflag (!%p258_p3), [#allocation3], %s1574_s16  ;;  %s1578_s15 = scalar_lea.vmem (!%p258_p3), [#allocation2], %s1113_s17 }
  0x37   : > { %1395 = dma.done.wait (%p1513_p6), %s264_s18, 2048  }
  0x38   : > { %1397 = vsyncadd (%p1513_p6), %s264_s18, 4294965248  ;;  %v1585_v0 = vld [vmem:[%s1578_s15 + $0x40] sm:$0xff]  ;;  %v1588_v1 = vld [vmem:[%s1578_s15 + $0x48] sm:$0xff]  ;;  %v1421_v32 = vmov 0.0|0.0   ;;  %vm1422_vm0 = vmmov 0   ;;  %v1423_v33 = vmov 0.0  }
  0x39   : > { %v1591_v2 = vld [vmem:[%s1578_s15] sm:$0xff]  ;;  %v345_v3 = vadd.f32 %v1588_v1, %v1585_v0  ;;  %v1596_v4 = vld [vmem:[%s1578_s15 + $0x8] sm:$0xff]  ;;  %v1599_v5 = vld [vmem:[%s1578_s15 + $0x50] sm:$0xff]  ;;  %v361_v27 = vmax.f32 %v1585_v0, %v1588_v1  ;;  %1210 = vmatprep.subr.bf16.mxu0 %v1421_v32  ;;  %1185 = vmatprep.mubr.msk.f32.mxu0 %vm1422_vm0, %v1423_v33  ;;  %vm373_vm1 = vcmask 7168   ;;  %vm378_vm2 = vcmask 15360   ;;  %s1424_s17 = smov 126  }
  0x3a   : > { %v1602_v6 = vld [vmem:[%s1578_s15 + $0x58] sm:$0xff]  ;;  %v308_v7 = vadd.f32 %v1596_v4, %v1591_v2  ;;  %v1607_v8 = vld [vmem:[%s1578_s15 + $0x10] sm:$0xff]  ;;  %v324_v13 = vmax.f32 %v1591_v2, %v1596_v4  ;;  %v1627_v16 = vld [vmem:[%s1578_s15 + $0x20] sm:$0xff]  ;;  %vm383_vm3 = vcmask 23552   ;;  %vm389_vm4 = vcmask 261120   ;;  %s1114_s11 = sshll.u32 %s1574_s16, 6 }
  0x3b   : > { %v1610_v9 = vld [vmem:[%s1578_s15 + $0x18] sm:$0xff]  ;;  %346 = vadd.xlane.f32.xlu1 %v345_v3  ;;  %v348_v10 = vadd.f32 %v1602_v6, %v1599_v5  ;;  %v1621_v14 = vld [vmem:[%s1578_s15 + $0x30] sm:$0xff]  ;;  %v1630_v17 = vld [vmem:[%s1578_s15 + $0x28] sm:$0xff]  ;;  %v364_v26 = vmax.f32 %v1599_v5, %v1602_v6  ;;  %vm480_vm5 = vcmask 1041408   ;;  %p1831_p11 = scmp.ne.s32.totalorder %s1828_s13, 0  ;;  %s1427_s29 = smov [#allocation5]  }
  0x3c   : > { %309 = vadd.xlane.f32.xlu0 %v308_v7  ;;  %v311_v11 = vadd.f32 %v1610_v9, %v1607_v8  ;;  %v327_v12 = vmax.f32 %v1607_v8, %v1610_v9  ;;  %v1624_v15 = vld [vmem:[%s1578_s15 + $0x38] sm:$0xff]  ;;  %v314_v19 = vadd.f32 %v1630_v17, %v1627_v16  ;;  %v1637_v20 = vld [vmem:[%s1578_s15 + $0x70] sm:$0xff]  ;;  %v1643_v22 = vld [vmem:[%s1578_s15 + $0x60] sm:$0xff]  ;;  %v330_v29 = vmax.f32 %v1627_v16, %v1630_v17  ;;  %s1354_s19 = sshll.u32 %s1427_s29, 4  ;;  %s1355_s19 = int_to_ptr.vmem [resolvable:$false] %s1354_s19 }
  0x3d   : > { %v317_v18 = vadd.f32 %v1624_v15, %v1621_v14  ;;  %v1640_v21 = vld [vmem:[%s1578_s15 + $0x78] sm:$0xff]  ;;  %v1646_v23 = vld [vmem:[%s1578_s15 + $0x68] sm:$0xff]  ;;  %v333_v28 = vmax.f32 %v1621_v14, %v1624_v15  ;;  %s1158_s15 = sshll.u32 %s1491_s28, 10  ;;  %s1018_s28 = scalar_lea.sflag [#allocation4], %s1574_s16 }
  0x3e   : > { %v354_v24 = vadd.f32 %v1640_v21, %v1637_v20  ;;  %v351_v25 = vadd.f32 %v1646_v23, %v1643_v22  ;;  %v370_v30 = vmax.f32 %v1637_v20, %v1640_v21  ;;  %v367_v31 = vmax.f32 %v1643_v22, %v1646_v23  ;;  %s1773_s22 = scalar_lea.hbm %s1824_s7, %s1158_s15  ;;  %s1356_s21 = scalar_lea.vmem %s1355_s19, 2048 }
  0x3f   : > { %349 = vadd.xlane.f32.xlu1 %v348_v10 }
  0x40   : > { %312 = vadd.xlane.f32.xlu0 %v311_v11 }
  0x43   : > { %328 = vmax.xlane.f32.xlu1 %v327_v12 }
  0x44   : > { %325 = vmax.xlane.f32.xlu0 %v324_v13 }
  0x47   : > { %318 = vadd.xlane.f32.xlu1 %v317_v18 }
  0x48   : > { %315 = vadd.xlane.f32.xlu0 %v314_v19 }
  0x4b   : > { %355 = vadd.xlane.f32.xlu1 %v354_v24  ;;  %v388_v24 = vld [vmem:[%s1818_s1] sm:$0x3] }
  0x4c   : > { %352 = vadd.xlane.f32.xlu0 %v351_v25  ;;  %v464_v25 = vld [vmem:[%s1819_s2] sm:$0xff] }
  0x4d   : > { %1190 = vmatprep.mubr.msk.f32.mxu1 %vm378_vm2, %v464_v25  ;;  %v614_v25 = vld [vmem:[%s1820_s3 + $0x8] sm:$0xff] }
  0x4f   : > { %365 = vmax.xlane.f32.xlu1 %v364_v26 }
  0x50   : > { %362 = vmax.xlane.f32.xlu0 %v361_v27 }
  0x53   : > { %334 = vmax.xlane.f32.xlu1 %v333_v28 }
  0x54   : > { %331 = vmax.xlane.f32.xlu0 %v330_v29  ;;  %v465_v29 = vld [vmem:[%s1819_s2 + $0x8] sm:$0xff] }
  0x57   : > { %371 = vmax.xlane.f32.xlu1 %v370_v30  ;;  %v466_v30 = vld [vmem:[%s1819_s2 + $0x10] sm:$0xff] }
  0x58   : > { %368 = vmax.xlane.f32.xlu0 %v367_v31  ;;  %v467_v31 = vld [vmem:[%s1819_s2 + $0x18] sm:$0xff] }
  0xc8   : > { %v347_v34 = vpop.xlane.xlu1 %346 }
  0xc9   : > { %v310_v35 = vpop.xlane.xlu0 %309  ;;  %v357_v44 = vmul.f32 0.00390625, %v347_v34 }
  0xca   : > { %v320_v45 = vmul.f32 0.00390625, %v310_v35 }
  0xcc   : > { %v350_v36 = vpop.xlane.xlu1 %349  ;;  %v374_v50 = vsel %vm373_vm1, %v320_v45, %v357_v44 }
  0xcd   : > { %v313_v37 = vpop.xlane.xlu0 %312  ;;  %v358_v41 = vmul.f32 0.00390625, %v350_v36 }
  0xce   : > { %v321_v42 = vmul.f32 0.00390625, %v313_v37 }
  0xd0   : > { %v329_v38 = vpop.xlane.xlu1 %328  ;;  %v375_v47 = vsel %vm373_vm1, %v321_v42, %v358_v41 }
  0xd1   : > { %v326_v39 = vpop.xlane.xlu0 %325  ;;  %v380_v49 = vsel %vm378_vm2, %v375_v47, %v329_v38 }
  0xd2   : > { %v379_v52 = vsel %vm378_vm2, %v374_v50, %v326_v39 }
  0xd4   : > { %v319_v40 = vpop.xlane.xlu1 %318 }
  0xd5   : > { %v316_v43 = vpop.xlane.xlu0 %315  ;;  %v323_v60 = vmul.f32 0.00390625, %v319_v40 }
  0xd6   : > { %v322_v62 = vmul.f32 0.00390625, %v316_v43 }
  0xd8   : > { %v356_v46 = vpop.xlane.xlu1 %355 }
  0xd9   : > { %v353_v48 = vpop.xlane.xlu0 %352  ;;  %v360_v56 = vmul.f32 0.00390625, %v356_v46 }
  0xda   : > { %v359_v58 = vmul.f32 0.00390625, %v353_v48 }
  0xdb   : > { %v377_v63 = vsel %vm373_vm1, %v323_v60, %v360_v56  ;;  %v618_v60 = vld [vmem:[%s1821_s4 + $0x8] sm:$0xff] }
  0xdc   : > { %v366_v51 = vpop.xlane.xlu1 %365  ;;  %v376_v7 = vsel %vm373_vm1, %v322_v62, %v359_v58  ;;  %v617_v58 = vld [vmem:[%s1821_s4] sm:$0xff]  ;;  %v619_v62 = vld [vmem:[%s1821_s4 + $0x10] sm:$0xff] }
  0xdd   : > { %v385_v53 = vsel %vm383_vm3, %v380_v49, %v366_v51  ;;  %v363_v54 = vpop.xlane.xlu0 %362 }
  0xde   : > { %v384_v55 = vsel %vm383_vm3, %v379_v52, %v363_v54 }
  0xdf   : > { %v1211_v57 = vpack.c.bf16 %v385_v53, %v384_v55  ;;  %v613_v55 = vld [vmem:[%s1820_s3] sm:$0xff] }
  0xe0   : > { %v335_v59 = vpop.xlane.xlu1 %334 }
  0xe1   : > { %1212 = vmatpush3.bf16.msra.mxu0 %v1211_v57  ;;  %v332_v61 = vpop.xlane.xlu0 %331  ;;  %v382_v3 = vsel %vm378_vm2, %v377_v63, %v335_v59  ;;  %v1425_v59 = vmov 0  }
  0xe2   : > { %1213 = vmatprep.subr.bf16.mxu0 %v1421_v32  ;;  %v381_v11 = vsel %vm378_vm2, %v376_v7, %v332_v61  ;;  %1296 = vset.pattern.permute.xlu0 %v1425_v59  ;;  %v620_v61 = vld [vmem:[%s1821_s4 + $0x18] sm:$0xff] }
  0xe3   : > { %1297 = vset.pattern.permute.xlu1 %v1425_v59 }
  0xe4   : > { %v372_v10 = vpop.xlane.xlu1 %371 }
  0xe5   : > { %v387_v12 = vsel %vm383_vm3, %v382_v3, %v372_v10  ;;  %v369_v13 = vpop.xlane.xlu0 %368 }
  0xe6   : > { %v386_v18 = vsel %vm383_vm3, %v381_v11, %v369_v13 }
  0xe7   : > { %v1214_v19 = vpack.c.bf16 %v387_v12, %v386_v18 }
  0xe9   : > { %1215 = vmatpush3.bf16.msra.mxu0 %v1214_v19 }
  0xec   : > { %1186 = vmatmul.mubr.msk.f32.vlgmr.msra.gmra.mrb[0].mxu0 %vm389_vm4, %v388_v24 }
  0xed   : > { %858 = vmatprep.mubr.f32.mxu0 %v1423_v33 }
 0x1bf   : > { %v459_v26 = vpop.f32.mrb[0].mxu0 }
 0x1c0   : > { %v463_v27 = vmax.f32 %v459_v26, 0.0  ;;  %v1187_v28 = vpop.f32.mrb[1].mxu0  ;;  %v615_v26 = vld [vmem:[%s1820_s3 + $0x10] sm:$0xff] }
 0x1c2   : > { %1188 = vmatprep.subr.msk.mxu1 %vm480_vm5, %v463_v27 }
 0x1c3   : > { %1189 = vmatpush3.msk.msra.mxu1 %vm480_vm5, %v463_v27  ;;  %v616_v27 = vld [vmem:[%s1820_s3 + $0x18] sm:$0xff] }
 0x1c4   : > { %1191 = vmatmul.mubr.msk.f32.vlgmr.msra.gmra.mrb[0].mxu1 %vm378_vm2, %v465_v29 }
 0x1c5   : > { %1193 = vmatprep.mubr.msk.f32.mxu1 %vm378_vm2, %v466_v30 }
 0x1c8   : > { %1194 = vmatmul.mubr.msk.f32.gmra.mrb[2].mxu1 %vm378_vm2, %v467_v31 }
 0x1c9   : > { %1204 = vmatprep.mubr.msk.f32.mxu1 %vm389_vm4, %v613_v55 }
 0x297   : > { %v1192_v32 = vpop.f32.mrb[0].mxu1 }
 0x298   : > { %v570_v34 = vsub.f32 0.0, %v1192_v32  ;;  %v550_v35 = vpop.f32.mrb[1].mxu1 }
 0x299   : > { %v569_v36 = vsub.f32 0.0, %v550_v35 }
 0x29a   : > { %v575_v37 = vmul.f32 1.442695, %v570_v34 }
 0x29b   : > { %v573_v38 = vmul.f32 1.442695, %v569_v36  ;;  %v1195_v39 = vpop.f32.mrb[2].mxu1 }
 0x29c   : > { %1304 = vpow2.f32 %v575_v37  ;;  %v572_v40 = vsub.f32 0.0, %v1195_v39  ;;  %v560_v41 = vpop.f32.mrb[3].mxu1 }
 0x29d   : > { %1306 = vpow2.f32 %v573_v38  ;;  %v571_v42 = vsub.f32 0.0, %v560_v41 }
 0x29e   : > { %v579_v43 = vmul.f32 1.442695, %v572_v40 }
 0x29f   : > { %v577_v44 = vmul.f32 1.442695, %v571_v42 }
 0x2a0   : > { %1308 = vpow2.f32 %v579_v43 }
 0x2a1   : > { %1310 = vpow2.f32 %v577_v44 }
 0x2a6   : > { %v1305_v45 = vpop.eup %1304 }
 0x2a7   : > { %v1307_v46 = vpop.eup %1306  ;;  %v582_v47 = vadd.f32 1.0, %v1305_v45 }
 0x2a8   : > { %v581_v48 = vadd.f32 1.0, %v1307_v46  ;;  %v1426_v46 = vmov 1  }
 0x2a9   : > { %1312 = vrcp.f32 %v582_v47 }
 0x2aa   : > { %v1309_v49 = vpop.eup %1308  ;;  %1314 = vrcp.f32 %v581_v48 }
 0x2ab   : > { %v1311_v50 = vpop.eup %1310  ;;  %v584_v52 = vadd.f32 1.0, %v1309_v49 }
 0x2ac   : > { %v583_v51 = vadd.f32 1.0, %v1311_v50  ;;  %v777_v50 = vld [vmem:[%s1823_s6 + $0x8] sm:$0xff] }
 0x2ae   : > { %1316 = vrcp.f32 %v583_v51  ;;  %v776_v51 = vld [vmem:[%s1823_s6] sm:$0xff] }
 0x2af   : > { %1318 = vrcp.f32 %v584_v52 }
 0x2b3   : > { %v1313_v53 = vpop.eup %1312 }
 0x2b4   : > { %v1315_v54 = vpop.eup %1314  ;;  %599 = vrot.lane.b32.xlu1 %v1313_v53, %s1424_s17 }
 0x2b5   : > { %597 = vrot.lane.b32.xlu0 %v1315_v54, %s1424_s17 }
 0x2b8   : > { %v1317_v56 = vpop.eup %1316 }
 0x2b9   : > { %601 = vrot.lane.b32.xlu1 %v1317_v56, %s1424_s17  ;;  %v1319_v57 = vpop.eup %1318  ;;  %623 = vperm.xlu0 %1296, %v617_v58  }
 0x2bd   : > { %603 = vrot.lane.b32.xlu1 %v1319_v57, %s1424_s17  ;;  %638 = vperm.xlu0 %1296, %v620_v61   ;;  %s297_s17 = scalar_lea.vmem [#allocation5], %s1114_s11 }
 0x2be   : > { %s1032_s18 = sshll.u32 %s297_s17, 4  ;;  %s1768_s18 = int_to_ptr.vmem [resolvable:$true] %s1032_s18 }
 0x2bf   : > { %s1350_s23 = scalar_lea.vmem %s1768_s18, 1024  ;;  %p1357_p8 = scmp.lt.s32.totalorder %s1768_s18, %s1355_s19 }
 0x2c0   : > { %p1351_p6 = scmp.ne.s32.totalorder %s1768_s18, %s1350_s23  ;;  %p1358_p10 = scmp.lt.s32.totalorder %s1356_s21, %s1350_s23 }
 0x2c1   : > { %628 = vperm.xlu1 %1297, %v618_v60  }
 0x2c2   : > { %p1352_p12 = pnand %p1351_p6, %p1831_p11  ;;  %p1359_p0 = por %p1358_p10, %p1357_p8 }
 0x2c4   : > { %p1353_p13 = pneg %p1352_p12 }
 0x2c5   : > { %633 = vperm.xlu1 %1297, %v619_v62  }
 0x2c6   : > { %p1360_p2 = pnand %p1359_p0, %p1353_p13 }
 0x326   : > { %v600_v63 = vpop.permute.xlu1 %599 }
 0x327   : > { %v610_v3 = vadd.f32 %v1313_v53, %v600_v63  ;;  %v598_v7 = vpop.permute.xlu0 %597 }
 0x328   : > { %v609_v10 = vadd.f32 %v1315_v54, %v598_v7 }
 0x32a   : > { %v1216_v11 = vpack.c.bf16 %v610_v3, %v609_v10 }
 0x32b   : > { %v602_v12 = vpop.permute.xlu1 %601 }
 0x32c   : > { %1217 = vmatprep.subr.bf16.mxu1 %v1216_v11  ;;  %v611_v18 = vadd.f32 %v1317_v56, %v602_v12 }
 0x32d   : > { %1219 = vmatpush3.bf16.msra.mxu1 %v1216_v11 }
 0x32f   : > { %v604_v13 = vpop.permute.xlu1 %603 }
 0x330   : > { %v612_v19 = vadd.f32 %v1319_v57, %v604_v13 }
 0x332   : > { %v1220_v24 = vpack.c.bf16 %v612_v19, %v611_v18 }
 0x334   : > { %1221 = vmatprep.subr.bf16.mxu1 %v1220_v24 }
 0x335   : > { %1223 = vmatpush3.bf16.msra.mxu1 %v1220_v24 }
 0x338   : > { %1205 = vmatmul.mubr.msk.f32.vlgmr.msra.gmra.mrb[4].mxu1 %vm389_vm4, %v614_v25  ;;  %v624_v30 = vpop.permute.xlu0 %623 }
 0x339   : > { %1207 = vmatprep.mubr.msk.f32.mxu1 %vm389_vm4, %v615_v26 }
 0x33c   : > { %1208 = vmatmul.mubr.msk.f32.gmra.mrb[6].mxu1 %vm389_vm4, %v616_v27  ;;  %v639_v43 = vpop.permute.xlu0 %638 }
 0x33d   : > { %995 = vmatprep.mubr.f32.mxu1 %v1423_v33 }
 0x340   : > { %v629_v28 = vpop.permute.xlu1 %628 }
 0x344   : > { %v634_v36 = vpop.permute.xlu1 %633 }
 0x40b   : > { %v1206_v29 = vpop.f32.mrb[4].mxu1 }
 0x40c   : > { %v725_v31 = vadd.f32 %v1206_v29, %v629_v28  ;;  %v719_v32 = vpop.f32.mrb[5].mxu1 }
 0x40d   : > { %v720_v34 = vadd.f32 %v719_v32, %v624_v30 }
 0x40e   : > { %v739_v35 = vmax.f32 %v725_v31, 0.0 }
 0x40f   : > { %v738_v37 = vmax.f32 %v720_v34, 0.0  ;;  %v1209_v38 = vpop.f32.mrb[6].mxu1 }
 0x410   : > { %v743_v39 = vadd.f32 1.0, %v739_v35  ;;  %v729_v40 = vpop.f32.mrb[7].mxu1  ;;  %v735_v44 = vadd.f32 %v1209_v38, %v639_v43 }
 0x411   : > { %v742_v41 = vadd.f32 1.0, %v738_v37  ;;  %v730_v42 = vadd.f32 %v729_v40, %v634_v36 }
 0x412   : > { %753 = vperm.xlu0 %1296, %v743_v39   ;;  %v741_v47 = vmax.f32 %v735_v44, 0.0 }
 0x413   : > { %748 = vperm.xlu1 %1297, %v742_v41   ;;  %v740_v45 = vmax.f32 %v730_v42, 0.0 }
 0x414   : > { %v745_v49 = vadd.f32 1.0, %v741_v47 }
 0x415   : > { %v744_v48 = vadd.f32 1.0, %v740_v45 }
 0x416   : > { %1298 = vset.pattern.permute.xlu0 %v1426_v46 }
 0x417   : > { %1299 = vset.pattern.permute.xlu1 %v1426_v46  ;;  %892 = vperm.xlu0 %1298, %v743_v39  }
 0x418   : > { %888 = vperm.xlu1 %1299, %v742_v41  }
 0x41b   : > { %896 = vperm.xlu0 %1298, %v744_v48  }
 0x41c   : > { %1300 = vset.pattern.permute.xlu1 %v1425_v59 }
 0x41d   : > { %763 = vperm.xlu1 %1300, %v745_v49  }
 0x41f   : > { %1302 = vset.pattern.permute.xlu0 %v1425_v59 }
 0x420   : > { %780 = vperm.xlu0 %1302, %v776_v51  }
 0x421   : > { %758 = vperm.xlu1 %1300, %v744_v48  }
 0x424   : > { %922 = vperm.xlu0 %1302, %v777_v50  }
 0x425   : > { %1301 = vset.pattern.permute.xlu1 %v1426_v46 }
 0x426   : > { %900 = vperm.xlu1 %1301, %v745_v49  }
 0x42a   : > { %1303 = vset.pattern.permute.xlu1 %v1425_v59 }
 0x42b   : > { %785 = vperm.xlu1 %1303, %v777_v50  }
 0x42f   : > { %917 = vperm.xlu1 %1303, %v776_v51  }
 0x491   : > { %v754_v52 = vpop.permute.xlu0 %753 }
 0x492   : > { %v768_v53 = vmul.f32 %v754_v52, %v1607_v8  ;;  %v769_v54 = vmul.f32 %v754_v52, %v1610_v9  ;;  %v749_v55 = vpop.permute.xlu1 %748 }
 0x493   : > { %v766_v56 = vmul.f32 %v749_v55, %v1591_v2  ;;  %v767_v57 = vmul.f32 %v749_v55, %v1596_v4 }
 0x495   : > { %v1224_v58 = vpack.c.bf16 %v769_v54, %v767_v57  ;;  %v1226_v59 = vpack.c.bf16 %v768_v53, %v766_v56 }
 0x496   : > { %v893_v60 = vpop.permute.xlu0 %892 }
 0x497   : > { %v905_v61 = vmul.f32 %v1599_v5, %v893_v60  ;;  %v906_v62 = vmul.f32 %v1602_v6, %v893_v60  ;;  %1225 = vmatprep.subr.bf16.mxu0 %v1224_v58  ;;  %v889_v63 = vpop.permute.xlu1 %888 }
 0x498   : > { %v903_v3 = vmul.f32 %v1585_v0, %v889_v63  ;;  %v904_v8 = vmul.f32 %v1588_v1, %v889_v63  ;;  %1227 = vmatpush1.bf16.msra.mxu0 %v1226_v59 }
 0x49a   : > { %v1232_v9 = vpack.c.bf16 %v906_v62, %v904_v8  ;;  %v1234_v7 = vpack.c.bf16 %v905_v61, %v903_v3  ;;  %v897_v12 = vpop.permute.xlu0 %896 }
 0x49b   : > { %v907_v18 = vmul.f32 %v1643_v22, %v897_v12  ;;  %v908_v19 = vmul.f32 %v1646_v23, %v897_v12  ;;  %v775_v22 = vld [vmem:[%s1822_s5 + $0x8] sm:$0xff] }
 0x49c   : > { %1233 = vmatprep.subr.bf16.mxu1 %v1232_v9  ;;  %v764_v2 = vpop.permute.xlu1 %763 }
 0x49d   : > { %1235 = vmatpush1.bf16.msra.mxu1 %v1234_v7  ;;  %v772_v10 = vmul.f32 %v764_v2, %v1621_v14  ;;  %v773_v11 = vmul.f32 %v764_v2, %v1624_v15  ;;  %v774_v15 = vld [vmem:[%s1822_s5] sm:$0xff] }
 0x4a0   : > { %v759_v4 = vpop.permute.xlu1 %758 }
 0x4a1   : > { %v770_v5 = vmul.f32 %v759_v4, %v1627_v16  ;;  %v771_v6 = vmul.f32 %v759_v4, %v1630_v17 }
 0x4a3   : > { %v1228_v13 = vpack.c.bf16 %v773_v11, %v771_v6  ;;  %v1230_v0 = vpack.c.bf16 %v772_v10, %v770_v5 }
 0x4a5   : > { %1229 = vmatprep.subr.bf16.mxu0 %v1228_v13  ;;  %v901_v1 = vpop.permute.xlu1 %900 }
 0x4a6   : > { %v909_v24 = vmul.f32 %v1637_v20, %v901_v1  ;;  %v910_v14 = vmul.f32 %v1640_v21, %v901_v1  ;;  %1231 = vmatpush1.bf16.msra.mxu0 %v1230_v0  ;;  %v781_v21 = vpop.permute.xlu0 %780 }
 0x4a8   : > { %v1236_v16 = vpack.c.bf16 %v910_v14, %v908_v19  ;;  %v1238_v17 = vpack.c.bf16 %v909_v24, %v907_v18 }
 0x4a9   : > { %1133 = vmatmul.mubr.msk.f32.vlgmr.msra.gmra.mrb[2].mxu0 %vm389_vm4, %v774_v15 }
 0x4aa   : > { %1237 = vmatprep.subr.bf16.mxu1 %v1236_v16  ;;  %864 = vmatprep.mubr.f32.mxu0 %v1423_v33  ;;  %v786_v20 = vpop.permute.xlu1 %785  ;;  %v923_v43 = vpop.permute.xlu0 %922 }
 0x4ab   : > { %1239 = vmatpush1.bf16.msra.mxu1 %v1238_v17 }
 0x4ad   : > { %1134 = vmatmul.mubr.msk.f32.gmra.mrb[4].mxu0 %vm389_vm4, %v775_v22 }
 0x4ae   : > { %1143 = vmatmul.mubr.msk.f32.vlgmr.msra.gmra.mrb[8].mxu1 %vm389_vm4, %v774_v15  ;;  %v918_v29 = vpop.permute.xlu1 %917 }
 0x4af   : > { %1001 = vmatprep.mubr.f32.mxu1 %v1423_v33 }
 0x4b2   : > { %1144 = vmatmul.mubr.msk.f32.gmra.mrb[10].mxu1 %vm389_vm4, %v775_v22 }
 0x57c   : > { %v860_v23 = vpop.f32.mrb[2].mxu0 }
 0x57d   : > { %v861_v25 = vadd.f32 %v860_v23, %v781_v21  ;;  %v862_v26 = vpop.f32.mrb[3].mxu0 }
 0x57e   : > { %v863_v27 = vadd.f32 %v862_v26, %v781_v21 }
 0x57f   : > { %v871_v28 = vmax.f32 %v861_v25, 0.0 }
 0x580   : > { %v872_v30 = vmax.f32 %v863_v27, 0.0  ;;  %v866_v31 = vpop.f32.mrb[4].mxu0 }
 0x581   : > { %875 = vst [vmem:[%s297_s17] sm:$0xff] %v871_v28  ;;  %v997_v32 = vpop.f32.mrb[8].mxu1  ;;  %v867_v34 = vadd.f32 %v866_v31, %v786_v20  ;;  %v868_v35 = vpop.f32.mrb[5].mxu0 }
 0x582   : > { %876 = vst [vmem:[%s297_s17 + $0x8] sm:$0xff] %v872_v30  ;;  %v999_v33 = vpop.f32.mrb[9].mxu1  ;;  %v998_v36 = vadd.f32 %v997_v32, %v918_v29  ;;  %v869_v37 = vadd.f32 %v868_v35, %v786_v20 }
 0x583   : > { %v1000_v38 = vadd.f32 %v999_v33, %v918_v29  ;;  %v873_v39 = vmax.f32 %v867_v34, 0.0 }
 0x584   : > { %v1008_v40 = vmax.f32 %v998_v36, 0.0  ;;  %v874_v41 = vmax.f32 %v869_v37, 0.0 }
 0x585   : > { %v1009_v42 = vmax.f32 %v1000_v38, 0.0  ;;  %877 = vst [vmem:[%s297_s17 + $0x10] sm:$0xff] %v873_v39  ;;  %v1003_v44 = vpop.f32.mrb[10].mxu1 }
 0x586   : > { %1145 = vst [vmem:[%s297_s17 + $0x20] sm:$0xff] %v1008_v40  ;;  %878 = vst [vmem:[%s297_s17 + $0x18] sm:$0xff] %v874_v41  ;;  %v1004_v45 = vadd.f32 %v1003_v44, %v923_v43  ;;  %v1005_v46 = vpop.f32.mrb[11].mxu1 }
 0x587   : > { %1146 = vst [vmem:[%s297_s17 + $0x28] sm:$0xff] %v1009_v42  ;;  %v1006_v47 = vadd.f32 %v1005_v46, %v923_v43 }
 0x588   : > { %v1010_v48 = vmax.f32 %v1004_v45, 0.0 }
 0x589   : > { %v1011_v49 = vmax.f32 %v1006_v47, 0.0 }
 0x58a   : > { %1147 = vst [vmem:[%s297_s17 + $0x30] sm:$0xff] %v1010_v48 }
 0x58b   : > { %1148 = vst [vmem:[%s297_s17 + $0x38] sm:$0xff] %v1011_v49 }
 0x58c   : > { %1363 = shalt.err (!%p1360_p2)
}
 0x58d   : > { %s1364_s9 = scalar_lea.hbm %s1773_s22, 1024  ;;  %s1368_s17 = scalar_lea.hbm %s1824_s7, 2048 }
 0x58e   : > { %p1365_p4 = scmp.ne.s32.totalorder %s1773_s22, %s1364_s9  ;;  %p1369_p9 = scmp.lt.u32.totalorder %s1773_s22, %s1824_s7 }
 0x58f   : > { %p1370_p1 = scmp.lt.u32.totalorder %s1368_s17, %s1364_s9  ;;  %p1372_p6 = scmp.lt.u32.totalorder %s1364_s9, %s1773_s22 }
 0x590   : > { %p1366_p5 = pnand %p1365_p4, %p1831_p11 }
 0x591   : > { %p1371_p3 = por %p1370_p1, %p1369_p9 }
 0x592   : > { %p1367_p7 = pneg %p1366_p5 }
 0x593   : > { %p1373_p12 = por %p1372_p6, %p1371_p3 }
 0x595   : > { %p1374_p13 = pnand %p1373_p12, %p1367_p7 }
 0x597   : > { %1377 = shalt.err (!%p1374_p13)
}
 0x598   : > { %s1428_s20 = smov 256   ;;  %s1429_s23 = smov 16  }
 0x599   : > { %1242 = dma.vmem_to_hbm [thread:$0]  (%p1831_p11), %s1768_s18, 1024, %s1773_s22, %s1018_s28, %s1428_s20, %s1428_s20, %s1429_s23  }
 0x59a PF: > { %s1047_s29 = sand.u32 1, %s1404_s24   ;;  %p1832_p8 = scmp.ne.s32.totalorder %s1829_s14, 0 }
 0x59b   : > { %p1833_p10 = scmp.ge.s32.totalorder %s1416_s27, 2  ;;  %s1048_s19 = scalar_lea.sflag [#allocation4], %s1047_s29 }
 0x59d   : > { %p1249_p0 = pnand %p1833_p10, %p1832_p8 }
 0x59f   : > { %1399 = dma.done.wait (!%p1249_p0), %s1048_s19, 1024  }
 0x5a0   : > { %1401 = vsyncadd (!%p1249_p0), %s1048_s19, 4294966272  ;;  %p20_p2 = scmp.ge.s32.totalorder %s1495_s30, 4   ;;  %s1834_s24 = smov %s1408_s25 }
 0x5a1   : > { %s1835_s25 = smov %s1412_s26  ;;  %s1836_s26 = smov %s1507_s10 }
 0x5a2   : > { %s1837_s27 = smov %s1495_s30  ;;  %22 = sbr.rel (!%p20_p2) target bundleno = 5 (0x5), region = 95 }
 0x5a9   :  { %1053 = vsyncpa [#allocation3], 1 }
 0x5aa   :  { %1055 = vsyncpa [#allocation3 + $0x1], 1 }
 0x5ab   :  { %1056 = vsyncpa [#allocation4], 1 }
 0x5ac   :  { %1058 = vsyncpa [#allocation4 + $0x1], 1 }

</bundles_post_ra>
